<compile_context>
chip_gen: v7x
topology: tpu7x:2x2x1
jax: 0.10.0
libtpu: 0.0.40
codegen_flags: <defaults>
</compile_context>

<pallas_src>
import jax
import jax.numpy as jnp
from jax.experimental import pallas as pl
from jax.experimental.pallas import tpu as pltpu


def _round_up(x: int, m: int) -> int:
    return (x + m - 1) // m * m


def _vmem_capacity_bytes() -> int:
    try:
        return int(pltpu.get_tpu_info().vmem_capacity_bytes)
    except Exception:
        return 64 << 20  # conservative default (v7x per-core VMEM)


def pnet_kernel(x_ref, w1_ref, b1_ref, w2_ref, b2_ref, o_ref, acc_ref):
    h_idx = pl.program_id(1)

    @pl.when(h_idx == 0)
    def _():
        acc_ref[...] = jnp.zeros_like(acc_ref)

    # Cast x to the MXU compute dtype in-kernel (VPU work hidden under MXU);
    # x streams from HBM in its original dtype.
    xb = x_ref[...].astype(w1_ref.dtype)
    h = jnp.dot(xb, w1_ref[...], preferred_element_type=jnp.float32)
    h = jnp.maximum(h + b1_ref[...], 0.0)                     # bias + ReLU in f32
    acc_ref[...] += jnp.dot(h.astype(w2_ref.dtype), w2_ref[...],
                            preferred_element_type=jnp.float32)

    @pl.when(h_idx == pl.num_programs(1) - 1)
    def _():
        o_ref[...] = (acc_ref[...] + b2_ref[...]).astype(o_ref.dtype)


def prepare_pnet_params(w1, b1, w2, b2, compute_dtype=jnp.bfloat16):
    """One-time pad + cast of PNet weights (call once, reuse on every forward).

    w1: [D, H] (= PyTorch W1.T), b1: [H] or [1, H], w2: [H, P], b2: [P] or [1, P].
    Hidden/output dims are zero-padded to multiples of 128 so every MXU pass and
    every output store is lane-dense. Zero padding is exact for this math
    (padded hidden cols -> relu(0+0)=0, padded output cols -> 0+0=0, sliced off).
    """
    D, H = w1.shape
    P = w2.shape[1]
    Hp = _round_up(H, 128)
    Pp = _round_up(P, 128)
    b1 = jnp.reshape(b1, (1, H)).astype(jnp.float32)
    b2 = jnp.reshape(b2, (1, P)).astype(jnp.float32)
    w1p = jnp.zeros((D, Hp), compute_dtype).at[:, :H].set(w1.astype(compute_dtype))
    w2p = jnp.zeros((Hp, Pp), compute_dtype).at[:H, :P].set(w2.astype(compute_dtype))
    b1p = jnp.zeros((1, Hp), jnp.float32).at[:, :H].set(b1)
    b2p = jnp.zeros((1, Pp), jnp.float32).at[:, :P].set(b2)
    return {"w1": w1p, "b1": b1p, "w2": w2p, "b2": b2p, "D": D, "H": H, "P": P}


def pnet_forward(x, params, *, block_b=1024):
    """x: [B, D] -> [B, P] using pre-padded params from prepare_pnet_params."""
    w1p, b1p, w2p, b2p = params["w1"], params["b1"], params["w2"], params["b2"]
    D, P = params["D"], params["P"]
    B = x.shape[0]
    assert x.shape[1] == D, (x.shape, D)
    Hp, Pp = w1p.shape[1], w2p.shape[1]

    w_isz = jnp.dtype(w1p.dtype).itemsize
    x_isz = jnp.dtype(x.dtype).itemsize
    out_dtype = x.dtype
    out_isz = jnp.dtype(out_dtype).itemsize

    vmem_cap = _vmem_capacity_bytes()

    # --- Hidden-dim tiling: keep per-step weight tiles inside a VMEM budget. ---
    weight_budget = vmem_cap // 3
    units = Hp // 128
    best = 1
    for t in range(units, 0, -1):            # largest 128-multiple that divides Hp
        if units % t:
            continue
        nbuf = 1 if t == units else 2        # tiled weights get double-buffered
        if nbuf * (D + Pp) * (t * 128) * w_isz <= weight_budget:
            best = t
            break
    TH = best * 128
    n_h = units // best

    # --- Batch tiling: balanced 16-aligned tiles, VMEM-gated, >=2 programs. ---
    act_budget = vmem_cap // 3
    tb_cap = _round_up(min(block_b, max(B, 16)), 16)

    def act_bytes(tb):
        return (2 * tb * D * x_isz            # double-buffered x tiles
                + 2 * tb * Pp * out_isz       # double-buffered output tiles
                + tb * Pp * 4                 # f32 accumulator scratch
                + tb * TH * 4 + tb * TH * w_isz   # h (f32) + h (bf16)
                + tb * Pp * 4)                # pre-store f32 intermediate

    while tb_cap > 16 and act_bytes(tb_cap) > act_budget:
        tb_cap = max(16, _round_up(tb_cap // 2, 16))

    n_b = max(1, pl.cdiv(B, tb_cap))
    if n_b == 1 and B >= 32:
        n_b = 2                               # keep both v7x TensorCores busy
    TB = _round_up(pl.cdiv(B, n_b), 16)
    n_b = pl.cdiv(B, TB)
    Bp = n_b * TB

    xp = x if Bp == B else jnp.zeros((Bp, D), x.dtype).at[:B, :].set(x)

    # --- VMEM limit (per generation) and cost hint. ---
    est = (act_bytes(TB)
           + (1 if n_h == 1 else 2) * (D * TH + TH * Pp) * w_isz
           + 2 * (TH + Pp) * 4)
    vmem_limit = int(min(max(2 * est + (4 << 20), 16 << 20), int(0.75 * vmem_cap)))

    cost = pl.CostEstimate(
        flops=2 * Bp * (D * Hp + Hp * Pp),
        transcendentals=0,
        bytes_accessed=int(Bp * D * x_isz + (D * Hp + Hp * Pp) * w_isz
                           + (Hp + Pp) * 4 + Bp * Pp * out_isz),
    )

    weights_constant = (n_h == 1)

    def build_call(single_buffer_resident):
        def resident(shape, index_map, is_constant):
            if single_buffer_resident and is_constant:
                return pl.BlockSpec(shape, index_map,
                                    pipeline_mode=pl.Buffered(1))
            return pl.BlockSpec(shape, index_map)

        in_specs = [
            pl.BlockSpec((TB, D), lambda i, h: (i, 0)),                 # x (streamed)
            resident((D, TH), lambda i, h: (0, h), weights_constant),   # W1
            resident((1, TH), lambda i, h: (0, h), weights_constant),   # b1
            resident((TH, Pp), lambda i, h: (h, 0), weights_constant),  # W2
            resident((1, Pp), lambda i, h: (0, 0), True),               # b2
        ]
        return pl.pallas_call(
            pnet_kernel,
            out_shape=jax.ShapeDtypeStruct((Bp, Pp), out_dtype),
            grid=(n_b, n_h),
            in_specs=in_specs,
            out_specs=pl.BlockSpec((TB, Pp), lambda i, h: (i, 0)),
            scratch_shapes=[pltpu.VMEM((TB, Pp), jnp.float32)],
            compiler_params=pltpu.CompilerParams(
                dimension_semantics=("parallel", "arbitrary"),
                vmem_limit_bytes=vmem_limit,
            ),
            cost_estimate=cost,
        )

    try:
        out_p = build_call(True)(xp, w1p, b1p, w2p, b2p)
    except Exception:
        # Portability fallback: default (double-buffered) resident specs.
        out_p = build_call(False)(xp, w1p, b1p, w2p, b2p)

    return out_p[:B, :P]


def init_pnet_params(key, input_dim, num_params, dtype=jnp.float32):
    """Deterministic init mimicking PyTorch nn.Linear default (uniform +-1/sqrt(fan_in))."""
    hidden = (input_dim + num_params) // 2
    k1, k2, k3, k4 = jax.random.split(key, 4)
    bound1 = 1.0 / jnp.sqrt(input_dim)
    bound2 = 1.0 / jnp.sqrt(hidden)
    # Stored as [in, out] (i.e. W.T relative to PyTorch's [out, in]).
    w1 = jax.random.uniform(k1, (input_dim, hidden), dtype, -bound1, bound1)
    b1 = jax.random.uniform(k2, (1, hidden), dtype, -bound1, bound1)
    w2 = jax.random.uniform(k3, (hidden, num_params), dtype, -bound2, bound2)
    b2 = jax.random.uniform(k4, (1, num_params), dtype, -bound2, bound2)
    return w1, b1, w2, b2


if __name__ == "__main__":
    key = jax.random.PRNGKey(0)
    batch = 8
    input_dim = 32
    num_params = 16

    kx, kp = jax.random.split(key)
    x = jax.random.normal(kx, (batch, input_dim), jnp.float32)
    w1, b1, w2, b2 = init_pnet_params(kp, input_dim, num_params)

    # One-time weight prep (pad + bf16 cast), reused by every forward call.
    params = prepare_pnet_params(w1, b1, w2, b2)

    out = jax.block_until_ready(pnet_forward(x, params))
    assert out.shape == (batch, num_params)

    # Reference mirroring the kernel numerics (bf16 storage, f32 accumulate).
    xb = x.astype(jnp.bfloat16).astype(jnp.float32)
    w1b = w1.astype(jnp.bfloat16).astype(jnp.float32)
    w2b = w2.astype(jnp.bfloat16).astype(jnp.float32)
    h_ref = jnp.maximum(xb @ w1b + b1, 0.0)
    ref = h_ref.astype(jnp.bfloat16).astype(jnp.float32) @ w2b + b2
    assert jnp.allclose(out, ref, atol=1e-3, rtol=1e-3), (
        float(jnp.max(jnp.abs(out - ref))))

    # Sanity vs. all-f32 PyTorch math (loose tolerance for bf16 storage).
    ref_f32 = jnp.maximum(x @ w1 + b1, 0.0) @ w2 + b2
    assert jnp.allclose(out, ref_f32, atol=5e-2, rtol=5e-2), (
        float(jnp.max(jnp.abs(out - ref_f32))))

    print("KERNEL_OK")
</pallas_src>

<mosaic_0001>
module attributes {stable_mosaic.version = 11 : i64} {
  func.func @pnet_kernel(%arg0: i32, %arg1: i32, %arg2: memref<16x32xf32, #tpu.memory_space<vmem>>, %arg3: memref<32x128xbf16, #tpu.memory_space<vmem>>, %arg4: memref<1x128xf32, #tpu.memory_space<vmem>>, %arg5: memref<128x128xbf16, #tpu.memory_space<vmem>>, %arg6: memref<1x128xf32, #tpu.memory_space<vmem>>, %arg7: memref<16x128xf32, #tpu.memory_space<vmem>>, %arg8: memref<16x128xf32, #tpu.memory_space<vmem>>) attributes {dimension_semantics = [#tpu.dimension_semantics<parallel>, #tpu.dimension_semantics<arbitrary>], iteration_bounds = array<i64: 1, 1>, scalar_prefetch = 0 : i64, scratch_operands = 1 : i64, tpu.core_type = #tpu.core_type<tc>, window_params = [{transform_indices = @transform_0, window_bounds = array<i64: 16, 32>}, {pipeline_mode = #tpu.pipeline_mode<synchronous>, transform_indices = @transform_1, window_bounds = array<i64: 32, 128>}, {pipeline_mode = #tpu.pipeline_mode<synchronous>, transform_indices = @transform_2, window_bounds = array<i64: 1, 128>}, {pipeline_mode = #tpu.pipeline_mode<synchronous>, transform_indices = @transform_3, window_bounds = array<i64: 128, 128>}, {pipeline_mode = #tpu.pipeline_mode<synchronous>, transform_indices = @transform_4, window_bounds = array<i64: 1, 128>}, {transform_indices = @transform_5, window_bounds = array<i64: 16, 128>}]} {
    %c0_i32 = arith.constant 0 : i32
    %0 = arith.cmpi eq, %arg1, %c0_i32 : i32
    %1 = arith.extui %0 : i1 to i32
    %c0_i32_0 = arith.constant 0 : i32
    %2 = arith.cmpi ne, %1, %c0_i32_0 : i32
    scf.if %2 {
      %cst_16 = arith.constant 0.000000e+00 : f32
      %21 = vector.broadcast %cst_16 : f32 to vector<16x128xf32>
      %c0_17 = arith.constant 0 : index
      %c0_18 = arith.constant 0 : index
      %22 = vector.load %arg8[%c0_17, %c0_18] : memref<16x128xf32, #tpu.memory_space<vmem>>, vector<16x128xf32>
      tpu.vector_store %arg8[%c0_17, %c0_18], %21 {strides = array<i32>} : memref<16x128xf32, #tpu.memory_space<vmem>>, vector<16x128xf32>,
    } else {
    }
    %c0 = arith.constant 0 : index
    %c0_1 = arith.constant 0 : index
    %3 = vector.load %arg2[%c0, %c0_1] : memref<16x32xf32, #tpu.memory_space<vmem>>, vector<16x32xf32>
    %4 = arith.truncf %3 : vector<16x32xf32> to vector<16x32xbf16>
    %c0_2 = arith.constant 0 : index
    %c0_3 = arith.constant 0 : index
    %5 = vector.load %arg3[%c0_2, %c0_3] : memref<32x128xbf16, #tpu.memory_space<vmem>>, vector<32x128xbf16>
    %cst = arith.constant dense<0.000000e+00> : vector<16x128xf32>
    %6 = tpu.matmul %4, %5, %cst {dimension_numbers = #tpu.dot_dimension_numbers<[1], [0], [0], [1], [0, 0, 1, 1], [], []>} : vector<16x32xbf16>, vector<32x128xbf16>, vector<16x128xf32> -> vector<16x128xf32>
    %c0_4 = arith.constant 0 : index
    %c0_5 = arith.constant 0 : index
    %7 = vector.load %arg4[%c0_4, %c0_5] : memref<1x128xf32, #tpu.memory_space<vmem>>, vector<1x128xf32>
    %8 = vector.broadcast %7 : vector<1x128xf32> to vector<16x128xf32>
    %9 = arith.addf %6, %8 : vector<16x128xf32>
    %cst_6 = arith.constant 0.000000e+00 : f32
    %10 = vector.broadcast %cst_6 : f32 to vector<16x128xf32>
    %11 = arith.maximumf %9, %10 : vector<16x128xf32>
    %c0_7 = arith.constant 0 : index
    %c0_8 = arith.constant 0 : index
    %12 = vector.load %arg8[%c0_7, %c0_8] : memref<16x128xf32, #tpu.memory_space<vmem>>, vector<16x128xf32>
    %13 = arith.truncf %11 : vector<16x128xf32> to vector<16x128xbf16>
    %c0_9 = arith.constant 0 : index
    %c0_10 = arith.constant 0 : index
    %14 = vector.load %arg5[%c0_9, %c0_10] : memref<128x128xbf16, #tpu.memory_space<vmem>>, vector<128x128xbf16>
    %cst_11 = arith.constant dense<0.000000e+00> : vector<16x128xf32>
    %15 = tpu.matmul %13, %14, %cst_11 {dimension_numbers = #tpu.dot_dimension_numbers<[1], [0], [0], [1], [0, 0, 1, 1], [], []>} : vector<16x128xbf16>, vector<128x128xbf16>, vector<16x128xf32> -> vector<16x128xf32>
    %16 = arith.addf %12, %15 : vector<16x128xf32>
    %c0_12 = arith.constant 0 : index
    %c0_13 = arith.constant 0 : index
    %17 = vector.load %arg8[%c0_12, %c0_13] : memref<16x128xf32, #tpu.memory_space<vmem>>, vector<16x128xf32>
    tpu.vector_store %arg8[%c0_12, %c0_13], %16 {strides = array<i32>} : memref<16x128xf32, #tpu.memory_space<vmem>>, vector<16x128xf32>,
    %c0_i32_14 = arith.constant 0 : i32
    %18 = arith.cmpi eq, %arg1, %c0_i32_14 : i32
    %19 = arith.extui %18 : i1 to i32
    %c0_i32_15 = arith.constant 0 : i32
    %20 = arith.cmpi ne, %19, %c0_i32_15 : i32
    scf.if %20 {
      %c0_16 = arith.constant 0 : index
      %c0_17 = arith.constant 0 : index
      %21 = vector.load %arg8[%c0_16, %c0_17] : memref<16x128xf32, #tpu.memory_space<vmem>>, vector<16x128xf32>
      %c0_18 = arith.constant 0 : index
      %c0_19 = arith.constant 0 : index
      %22 = vector.load %arg6[%c0_18, %c0_19] : memref<1x128xf32, #tpu.memory_space<vmem>>, vector<1x128xf32>
      %23 = vector.broadcast %22 : vector<1x128xf32> to vector<16x128xf32>
      %24 = arith.addf %21, %23 : vector<16x128xf32>
      %c0_20 = arith.constant 0 : index
      %c0_21 = arith.constant 0 : index
      %25 = vector.load %arg7[%c0_20, %c0_21] : memref<16x128xf32, #tpu.memory_space<vmem>>, vector<16x128xf32>
      tpu.vector_store %arg7[%c0_20, %c0_21], %24 {strides = array<i32>} : memref<16x128xf32, #tpu.memory_space<vmem>>, vector<16x128xf32>,
    } else {
    }
    return
  }
  func.func @transform_0(%arg0: i32, %arg1: i32) -> (i32, i32) {
    %c0_i32 = arith.constant 0 : i32
    %c0_i32_0 = arith.constant 0 : i32
    return %arg0, %c0_i32 : i32, i32
  }
  func.func @transform_1(%arg0: i32, %arg1: i32) -> (i32, i32) {
    %c0_i32 = arith.constant 0 : i32
    %c0_i32_0 = arith.constant 0 : i32
    return %c0_i32, %arg1 : i32, i32
  }
  func.func @transform_2(%arg0: i32, %arg1: i32) -> (i32, i32) {
    %c0_i32 = arith.constant 0 : i32
    %c0_i32_0 = arith.constant 0 : i32
    return %c0_i32, %arg1 : i32, i32
  }
  func.func @transform_3(%arg0: i32, %arg1: i32) -> (i32, i32) {
    %c0_i32 = arith.constant 0 : i32
    %c0_i32_0 = arith.constant 0 : i32
    return %arg1, %c0_i32 : i32, i32
  }
  func.func @transform_4(%arg0: i32, %arg1: i32) -> (i32, i32) {
    %c0_i32 = arith.constant 0 : i32
    %c0_i32_0 = arith.constant 0 : i32
    %c0_i32_1 = arith.constant 0 : i32
    return %c0_i32, %c0_i32_0 : i32, i32
  }
  func.func @transform_5(%arg0: i32, %arg1: i32) -> (i32, i32) {
    %c0_i32 = arith.constant 0 : i32
    %c0_i32_0 = arith.constant 0 : i32
    return %arg0, %c0_i32 : i32, i32
  }
}

module attributes {stable_mosaic.version = 11 : i64} {
  func.func @pnet_kernel(%arg0: i32, %arg1: i32, %arg2: memref<16x32xf32, #tpu.memory_space<vmem>>, %arg3: memref<32x128xbf16, #tpu.memory_space<vmem>>, %arg4: memref<1x128xf32, #tpu.memory_space<vmem>>, %arg5: memref<128x128xbf16, #tpu.memory_space<vmem>>, %arg6: memref<1x128xf32, #tpu.memory_space<vmem>>, %arg7: memref<16x128xf32, #tpu.memory_space<vmem>>, %arg8: memref<16x128xf32, #tpu.memory_space<vmem>>) attributes {dimension_semantics = [#tpu.dimension_semantics<parallel>, #tpu.dimension_semantics<arbitrary>], iteration_bounds = array<i64: 1, 1>, scalar_prefetch = 0 : i64, scratch_operands = 1 : i64, tpu.core_type = #tpu.core_type<tc>, window_params = [{transform_indices = @transform_0, window_bounds = array<i64: 16, 32>}, {transform_indices = @transform_1, window_bounds = array<i64: 32, 128>}, {transform_indices = @transform_2, window_bounds = array<i64: 1, 128>}, {transform_indices = @transform_3, window_bounds = array<i64: 128, 128>}, {pipeline_mode = #tpu.pipeline_mode<synchronous>, transform_indices = @transform_4, window_bounds = array<i64: 1, 128>}, {transform_indices = @transform_5, window_bounds = array<i64: 16, 128>}]} {
    %c0_i32 = arith.constant 0 : i32
    %0 = arith.cmpi eq, %arg1, %c0_i32 : i32
    %1 = arith.extui %0 : i1 to i32
    %c0_i32_0 = arith.constant 0 : i32
    %2 = arith.cmpi ne, %1, %c0_i32_0 : i32
    scf.if %2 {
      %cst_16 = arith.constant 0.000000e+00 : f32
      %21 = vector.broadcast %cst_16 : f32 to vector<16x128xf32>
      %c0_17 = arith.constant 0 : index
      %c0_18 = arith.constant 0 : index
      %22 = vector.load %arg8[%c0_17, %c0_18] : memref<16x128xf32, #tpu.memory_space<vmem>>, vector<16x128xf32>
      tpu.vector_store %arg8[%c0_17, %c0_18], %21 {strides = array<i32>} : memref<16x128xf32, #tpu.memory_space<vmem>>, vector<16x128xf32>,
    } else {
    }
    %c0 = arith.constant 0 : index
    %c0_1 = arith.constant 0 : index
    %3 = vector.load %arg2[%c0, %c0_1] : memref<16x32xf32, #tpu.memory_space<vmem>>, vector<16x32xf32>
    %4 = arith.truncf %3 : vector<16x32xf32> to vector<16x32xbf16>
    %c0_2 = arith.constant 0 : index
    %c0_3 = arith.constant 0 : index
    %5 = vector.load %arg3[%c0_2, %c0_3] : memref<32x128xbf16, #tpu.memory_space<vmem>>, vector<32x128xbf16>
    %cst = arith.constant dense<0.000000e+00> : vector<16x128xf32>
    %6 = tpu.matmul %4, %5, %cst {dimension_numbers = #tpu.dot_dimension_numbers<[1], [0], [0], [1], [0, 0, 1, 1], [], []>} : vector<16x32xbf16>, vector<32x128xbf16>, vector<16x128xf32> -> vector<16x128xf32>
    %c0_4 = arith.constant 0 : index
    %c0_5 = arith.constant 0 : index
    %7 = vector.load %arg4[%c0_4, %c0_5] : memref<1x128xf32, #tpu.memory_space<vmem>>, vector<1x128xf32>
    %8 = vector.broadcast %7 : vector<1x128xf32> to vector<16x128xf32>
    %9 = arith.addf %6, %8 : vector<16x128xf32>
    %cst_6 = arith.constant 0.000000e+00 : f32
    %10 = vector.broadcast %cst_6 : f32 to vector<16x128xf32>
    %11 = arith.maximumf %9, %10 : vector<16x128xf32>
    %c0_7 = arith.constant 0 : index
    %c0_8 = arith.constant 0 : index
    %12 = vector.load %arg8[%c0_7, %c0_8] : memref<16x128xf32, #tpu.memory_space<vmem>>, vector<16x128xf32>
    %13 = arith.truncf %11 : vector<16x128xf32> to vector<16x128xbf16>
    %c0_9 = arith.constant 0 : index
    %c0_10 = arith.constant 0 : index
    %14 = vector.load %arg5[%c0_9, %c0_10] : memref<128x128xbf16, #tpu.memory_space<vmem>>, vector<128x128xbf16>
    %cst_11 = arith.constant dense<0.000000e+00> : vector<16x128xf32>
    %15 = tpu.matmul %13, %14, %cst_11 {dimension_numbers = #tpu.dot_dimension_numbers<[1], [0], [0], [1], [0, 0, 1, 1], [], []>} : vector<16x128xbf16>, vector<128x128xbf16>, vector<16x128xf32> -> vector<16x128xf32>
    %16 = arith.addf %12, %15 : vector<16x128xf32>
    %c0_12 = arith.constant 0 : index
    %c0_13 = arith.constant 0 : index
    %17 = vector.load %arg8[%c0_12, %c0_13] : memref<16x128xf32, #tpu.memory_space<vmem>>, vector<16x128xf32>
    tpu.vector_store %arg8[%c0_12, %c0_13], %16 {strides = array<i32>} : memref<16x128xf32, #tpu.memory_space<vmem>>, vector<16x128xf32>,
    %c0_i32_14 = arith.constant 0 : i32
    %18 = arith.cmpi eq, %arg1, %c0_i32_14 : i32
    %19 = arith.extui %18 : i1 to i32
    %c0_i32_15 = arith.constant 0 : i32
    %20 = arith.cmpi ne, %19, %c0_i32_15 : i32
    scf.if %20 {
      %c0_16 = arith.constant 0 : index
      %c0_17 = arith.constant 0 : index
      %21 = vector.load %arg8[%c0_16, %c0_17] : memref<16x128xf32, #tpu.memory_space<vmem>>, vector<16x128xf32>
      %c0_18 = arith.constant 0 : index
      %c0_19 = arith.constant 0 : index
      %22 = vector.load %arg6[%c0_18, %c0_19] : memref<1x128xf32, #tpu.memory_space<vmem>>, vector<1x128xf32>
      %23 = vector.broadcast %22 : vector<1x128xf32> to vector<16x128xf32>
      %24 = arith.addf %21, %23 : vector<16x128xf32>
      %c0_20 = arith.constant 0 : index
      %c0_21 = arith.constant 0 : index
      %25 = vector.load %arg7[%c0_20, %c0_21] : memref<16x128xf32, #tpu.memory_space<vmem>>, vector<16x128xf32>
      tpu.vector_store %arg7[%c0_20, %c0_21], %24 {strides = array<i32>} : memref<16x128xf32, #tpu.memory_space<vmem>>, vector<16x128xf32>,
    } else {
    }
    return
  }
  func.func @transform_0(%arg0: i32, %arg1: i32) -> (i32, i32) {
    %c0_i32 = arith.constant 0 : i32
    %c0_i32_0 = arith.constant 0 : i32
    return %arg0, %c0_i32 : i32, i32
  }
  func.func @transform_1(%arg0: i32, %arg1: i32) -> (i32, i32) {
    %c0_i32 = arith.constant 0 : i32
    %c0_i32_0 = arith.constant 0 : i32
    return %c0_i32, %arg1 : i32, i32
  }
  func.func @transform_2(%arg0: i32, %arg1: i32) -> (i32, i32) {
    %c0_i32 = arith.constant 0 : i32
    %c0_i32_0 = arith.constant 0 : i32
    return %c0_i32, %arg1 : i32, i32
  }
  func.func @transform_3(%arg0: i32, %arg1: i32) -> (i32, i32) {
    %c0_i32 = arith.constant 0 : i32
    %c0_i32_0 = arith.constant 0 : i32
    return %arg1, %c0_i32 : i32, i32
  }
  func.func @transform_4(%arg0: i32, %arg1: i32) -> (i32, i32) {
    %c0_i32 = arith.constant 0 : i32
    %c0_i32_0 = arith.constant 0 : i32
    %c0_i32_1 = arith.constant 0 : i32
    return %c0_i32, %c0_i32_0 : i32, i32
  }
  func.func @transform_5(%arg0: i32, %arg1: i32) -> (i32, i32) {
    %c0_i32 = arith.constant 0 : i32
    %c0_i32_0 = arith.constant 0 : i32
    return %arg0, %c0_i32 : i32, i32
  }
}

</mosaic_0001>

<bundles_post_ra>
// kernel: tpu_custom_call.1
= control target key start
LH: loop header
LB: loop body
LE: loop exit
PB: predicated region body
PF: predicated region fallthrough
CT: control target
= control target key end

     0   :  { %10 = vsyncpa [#allocation4], 0  ;;  %s561_s0 = inlined_call_operand.hbm [shape: f32[16,32], index: 0, kind: input, shape index: {}]   ;;  %s562_s1 = inlined_call_operand.hbm [shape: bf16[32,128], index: 1, kind: input, shape index: {}]   ;;  %s563_s2 = inlined_call_operand.vmem [shape: f32[1,128], index: 2, kind: input, shape index: {}]   ;;  %s564_s3 = inlined_call_operand.hbm [shape: bf16[128,128], index: 3, kind: input, shape index: {}]   ;;  %s565_s4 = inlined_call_operand.vmem [shape: f32[1,128], index: 4, kind: input, shape index: {}]   ;;  %s566_s5 = inlined_call_operand.hbm [shape: f32[16,128], index: 5, kind: output, shape index: {}]  }
   0x1   :  { %11 = vsyncpa [#allocation7], 0 }
   0x2   :  { %12 = vsyncpa [#allocation5], 0  ;;  %s455_s18 = smov [#allocation6]   ;;  %s361_s22 = scalar_lea.hbm %s562_s1, 256 }
   0x3   :  { %s30_s19 = sshll.u32 %s455_s18, 4  ;;  %p362_p0 = scmp.ne.s32.totalorder %s562_s1, %s361_s22  ;;  %s31_s19 = int_to_ptr.vmem [resolvable:$true] %s30_s19 }
   0x4   :  { %p365_p1 = scmp.lt.u32.totalorder %s361_s22, %s562_s1 }
   0x6   :  { %p367_p2 = pnand %p365_p1, %p362_p0 }
   0x8   :  { %370 = shalt.err (!%p367_p2)
}
   0x9   :  { %s371_s27 = scalar_lea.vmem %s31_s19, 256  ;;  %p376_p4 = scmp.lt.s32.totalorder %s31_s19, %s31_s19 }
   0xa   :  { %p372_p3 = scmp.ne.s32.totalorder %s31_s19, %s371_s27  ;;  %p377_p5 = scmp.lt.s32.totalorder %s371_s27, %s371_s27 }
   0xc   :  { %p378_p6 = por %p377_p5, %p376_p4 }
   0xe   :  { %p379_p7 = pnand %p378_p6, %p372_p3 }
  0x10   :  { %382 = shalt.err (!%p379_p7)
}
  0x11   :  { %s456_s28 = smov 64   ;;  %s457_s29 = smov 4  }
  0x12   :  { %36 = dma.hbm_to_vmem [thread:$0]  %s562_s1, 256, %s31_s19, [#allocation7], %s456_s28, %s456_s28, %s457_s29  }
  0x13   :  { %s458_s7 = smov [#allocation3]   ;;  %s383_s11 = scalar_lea.hbm %s561_s0, 256 }
  0x14   :  { %s18_s8 = sshll.u32 %s458_s7, 4  ;;  %p384_p8 = scmp.ne.s32.totalorder %s561_s0, %s383_s11  ;;  %s19_s8 = int_to_ptr.vmem [resolvable:$true] %s18_s8 }
  0x15   :  { %p387_p9 = scmp.lt.u32.totalorder %s383_s11, %s561_s0 }
  0x17   :  { %p389_p10 = pnand %p387_p9, %p384_p8 }
  0x19   :  { %392 = shalt.err (!%p389_p10)
}
  0x1a   :  { %s393_s16 = scalar_lea.vmem %s19_s8, 256  ;;  %p398_p12 = scmp.lt.s32.totalorder %s19_s8, %s19_s8 }
  0x1b   :  { %p394_p11 = scmp.ne.s32.totalorder %s19_s8, %s393_s16  ;;  %p399_p13 = scmp.lt.s32.totalorder %s393_s16, %s393_s16 }
  0x1d   :  { %p400_p0 = por %p399_p13, %p398_p12 }
  0x1f   :  { %p401_p1 = pnand %p400_p0, %p394_p11 }
  0x21   :  { %404 = shalt.err (!%p401_p1)
}
  0x22   :  { %s459_s1 = smov 128   ;;  %s460_s17 = smov 8  }
  0x23   :  { %24 = dma.hbm_to_vmem [thread:$0]  %s561_s0, 256, %s19_s8, [#allocation4], %s459_s1, %s459_s1, %s460_s17  }
  0x24   :  { %s461_s20 = smov [#allocation8]   ;;  %s405_s24 = scalar_lea.hbm %s564_s3, 1024 }
  0x25   :  { %s44_s21 = sshll.u32 %s461_s20, 4  ;;  %p406_p2 = scmp.ne.s32.totalorder %s564_s3, %s405_s24  ;;  %s45_s21 = int_to_ptr.vmem [resolvable:$true] %s44_s21 }
  0x26   :  { %p409_p3 = scmp.lt.u32.totalorder %s405_s24, %s564_s3 }
  0x28   :  { %p411_p4 = pnand %p409_p3, %p406_p2 }
  0x2a   :  { %414 = shalt.err (!%p411_p4)
}
  0x2b   :  { %s415_s6 = scalar_lea.vmem %s45_s21, 1024  ;;  %p420_p6 = scmp.lt.s32.totalorder %s45_s21, %s45_s21 }
  0x2c   :  { %p416_p5 = scmp.ne.s32.totalorder %s45_s21, %s415_s6  ;;  %p421_p7 = scmp.lt.s32.totalorder %s415_s6, %s415_s6 }
  0x2e   :  { %p422_p8 = por %p421_p7, %p420_p6 }
  0x30   :  { %p423_p9 = pnand %p422_p8, %p416_p5 }
  0x32   :  { %426 = shalt.err (!%p423_p9)
}
  0x33   :  { %50 = dma.hbm_to_vmem [thread:$0]  %s564_s3, 1024, %s45_s21, [#allocation7], %s456_s28, %s456_s28, %s457_s29  }
  0x34   :  { %449 = dma.done.wait [#allocation4], 256  }
  0x35   :  { %450 = vsyncadd [#allocation4], 4294967040 }
  0x36   :  { %451 = dma.done.wait [#allocation7], 1280  }
  0x37   :  { %452 = vsyncadd [#allocation7], 4294966016  ;;  %v462_v0 = vmov 0.0   ;;  %vm463_vm0 = vmmov 0   ;;  %v351_v1 = vld [vmem:[#allocation6] sm:$0xff]   ;;  %v352_v2 = vld [vmem:[#allocation6 + $0x8] sm:$0xff]  }
  0x38   :  { %313 = vmatprep.subr.bf16.mxu0 %v462_v0  ;;  %317 = vmatprep.mubr.msk.bf16.mxu0 %vm463_vm0, %v462_v0  ;;  %v69_v3 = vld [vmem:[#allocation3] sm:$0xff]  ;;  %v70_v4 = vld [vmem:[#allocation3 + $0x8] sm:$0xff]  ;;  %vm95_vm1 = vcmask 261120   ;;  %v355_v8 = vld [vmem:[#allocation8 + $0x10] sm:$0xff]   ;;  %s464_s9 = smov [#allocation9]  }
  0x39   :  { %321 = vmatprep.subr.bf16.mxu1 %v462_v0  ;;  %337 = vmatprep.mubr.msk.bf16.mxu1 %vm463_vm0, %v462_v0  ;;  %v353_v5 = vld [vmem:[#allocation8] sm:$0xff]   ;;  %v71_v6 = vpack.c.bf16 %v70_v4, %v69_v3  ;;  %v354_v7 = vld [vmem:[#allocation8 + $0x8] sm:$0xff]   ;;  %v356_v9 = vld [vmem:[#allocation8 + $0x18] sm:$0xff]   ;;  %s275_s10 = sshll.u32 %s464_s9, 4  ;;  %s276_s10 = int_to_ptr.vmem [resolvable:$true] %s275_s10 }
  0x3a   :  { %314 = vmatpush3.bf16.msra.mxu0 %v351_v1  ;;  %322 = vmatpush3.bf16.msra.mxu1 %v353_v5  ;;  %v357_v10 = vld [vmem:[#allocation8 + $0x20] sm:$0xff]   ;;  %v358_v11 = vld [vmem:[#allocation8 + $0x28] sm:$0xff]   ;;  %v359_v12 = vld [vmem:[#allocation8 + $0x30] sm:$0xff]   ;;  %p432_p11 = scmp.lt.s32.totalorder %s276_s10, %s276_s10 }
  0x3b   :  { %315 = vmatprep.subr.bf16.mxu0 %v462_v0  ;;  %323 = vmatprep.subr.bf16.mxu1 %v462_v0  ;;  %v360_v13 = vld [vmem:[#allocation8 + $0x38] sm:$0xff]   ;;  %v288_v14 = vld [vmem:[%s563_s2] ss:$0 sm:$0xff]  ;;  %s427_s2 = scalar_lea.vmem %s276_s10, 256 }
  0x3c   :  { %v300_v24 = vld [vmem:[%s565_s4] ss:$0 sm:$0xff]  ;;  %p428_p10 = scmp.ne.s32.totalorder %s276_s10, %s427_s2  ;;  %p433_p12 = scmp.lt.s32.totalorder %s427_s2, %s427_s2 }
  0x3e   :  { %316 = vmatpush3.bf16.msra.mxu0 %v352_v2  ;;  %324 = vmatpush3.bf16.msra.mxu1 %v354_v7  ;;  %p434_p13 = por %p433_p12, %p432_p11 }
  0x3f   :  { %325 = vmatprep.subr.bf16.mxu1 %v462_v0 }
  0x40   :  { %p435_p0 = pnand %p434_p13, %p428_p10 }
  0x41   :  { %318 = vmatmul.mubr.msk.bf16.vlgmr.msra.gmra.mrb[0].mxu0 %vm95_vm1, %v71_v6 }
  0x42   :  { %326 = vmatpush3.bf16.msra.mxu1 %v355_v8 }
  0x43   :  { %327 = vmatprep.subr.bf16.mxu1 %v462_v0 }
  0x46   :  { %328 = vmatpush3.bf16.msra.mxu1 %v356_v9 }
  0x47   :  { %329 = vmatprep.subr.bf16.mxu1 %v462_v0 }
  0x4a   :  { %330 = vmatpush3.bf16.msra.mxu1 %v357_v10 }
  0x4b   :  { %331 = vmatprep.subr.bf16.mxu1 %v462_v0 }
  0x4e   :  { %332 = vmatpush3.bf16.msra.mxu1 %v358_v11 }
  0x4f   :  { %333 = vmatprep.subr.bf16.mxu1 %v462_v0 }
  0x52   :  { %334 = vmatpush3.bf16.msra.mxu1 %v359_v12 }
  0x53   :  { %335 = vmatprep.subr.bf16.mxu1 %v462_v0 }
  0x56   :  { %336 = vmatpush3.bf16.msra.mxu1 %v360_v13 }
 0x114   :  { %v133_v15 = vpop.f32.mrb[0].mxu0 }
 0x115   :  { %v134_v16 = vadd.f32 %v288_v14, %v133_v15  ;;  %v319_v17 = vpop.f32.mrb[1].mxu0 }
 0x116   :  { %v136_v18 = vpop.f32.mrb[2].mxu0 }
 0x117   :  { %v137_v19 = vadd.f32 %v288_v14, %v136_v18  ;;  %v320_v20 = vpop.f32.mrb[3].mxu0  ;;  %v140_v21 = vmax.f32 %v134_v16, 0.0 }
 0x119   :  { %v141_v22 = vmax.f32 %v137_v19, 0.0 }
 0x11b   :  { %v144_v23 = vpack.c.bf16 %v141_v22, %v140_v21 }
 0x11d   :  { %338 = vmatmul.mubr.bf16.vlgmr.msra.gmra.mrb[0].mxu1 %v144_v23 }
 0x1f0   :  { %v243_v25 = vpop.f32.mrb[0].mxu1 }
 0x1f1   :  { %v266_v26 = vadd.f32 %v300_v24, %v243_v25  ;;  %v339_v27 = vpop.f32.mrb[1].mxu1 }
 0x1f2   :  { %v246_v28 = vpop.f32.mrb[2].mxu1 }
 0x1f3   :  { %268 = vst [vmem:[#allocation9] sm:$0xff] %v266_v26  ;;  %v267_v29 = vadd.f32 %v300_v24, %v246_v28  ;;  %v340_v30 = vpop.f32.mrb[3].mxu1 }
 0x1f5   :  { %269 = vst [vmem:[#allocation9 + $0x8] sm:$0xff] %v267_v29 }
 0x1f6   :  { %438 = shalt.err (!%p435_p0)
}
 0x1f7   :  { %s439_s12 = scalar_lea.hbm %s566_s5, 256 }
 0x1f8   :  { %p440_p1 = scmp.ne.s32.totalorder %s566_s5, %s439_s12  ;;  %p443_p2 = scmp.lt.u32.totalorder %s439_s12, %s566_s5 }
 0x1fa   :  { %p445_p3 = pnand %p443_p2, %p440_p1 }
 0x1fc   :  { %448 = shalt.err (!%p445_p3)
}
 0x1fd   :  { %281 = dma.vmem_to_hbm [thread:$0]  %s276_s10, 256, %s566_s5, [#allocation5], %s459_s1, %s459_s1, %s460_s17  }
 0x1fe   :  { %453 = dma.done.wait [#allocation5], 256  }
 0x1ff   :  { %454 = vsyncadd [#allocation5], 4294967040 }
 0x200   :  { %285 = vsyncpa [#allocation4], 1 }
 0x201   :  { %286 = vsyncpa [#allocation7], 1 }
 0x202   :  { %287 = vsyncpa [#allocation5], 1 }

// kernel: tpu_custom_call.1
= control target key start
LH: loop header
LB: loop body
LE: loop exit
PB: predicated region body
PF: predicated region fallthrough
CT: control target
= control target key end

     0   :  { %10 = vsyncpa [#allocation4], 0  ;;  %s561_s0 = inlined_call_operand.hbm [shape: f32[16,32], index: 0, kind: input, shape index: {}]   ;;  %s562_s1 = inlined_call_operand.hbm [shape: bf16[32,128], index: 1, kind: input, shape index: {}]   ;;  %s563_s2 = inlined_call_operand.vmem [shape: f32[1,128], index: 2, kind: input, shape index: {}]   ;;  %s564_s3 = inlined_call_operand.hbm [shape: bf16[128,128], index: 3, kind: input, shape index: {}]   ;;  %s565_s4 = inlined_call_operand.vmem [shape: f32[1,128], index: 4, kind: input, shape index: {}]   ;;  %s566_s5 = inlined_call_operand.hbm [shape: f32[16,128], index: 5, kind: output, shape index: {}]  }
   0x1   :  { %11 = vsyncpa [#allocation7], 0 }
   0x2   :  { %12 = vsyncpa [#allocation5], 0  ;;  %s455_s18 = smov [#allocation6]   ;;  %s361_s22 = scalar_lea.hbm %s562_s1, 256 }
   0x3   :  { %s30_s19 = sshll.u32 %s455_s18, 4  ;;  %p362_p0 = scmp.ne.s32.totalorder %s562_s1, %s361_s22  ;;  %s31_s19 = int_to_ptr.vmem [resolvable:$true] %s30_s19 }
   0x4   :  { %p365_p1 = scmp.lt.u32.totalorder %s361_s22, %s562_s1 }
   0x6   :  { %p367_p2 = pnand %p365_p1, %p362_p0 }
   0x8   :  { %370 = shalt.err (!%p367_p2)
}
   0x9   :  { %s371_s27 = scalar_lea.vmem %s31_s19, 256  ;;  %p376_p4 = scmp.lt.s32.totalorder %s31_s19, %s31_s19 }
   0xa   :  { %p372_p3 = scmp.ne.s32.totalorder %s31_s19, %s371_s27  ;;  %p377_p5 = scmp.lt.s32.totalorder %s371_s27, %s371_s27 }
   0xc   :  { %p378_p6 = por %p377_p5, %p376_p4 }
   0xe   :  { %p379_p7 = pnand %p378_p6, %p372_p3 }
  0x10   :  { %382 = shalt.err (!%p379_p7)
}
  0x11   :  { %s456_s28 = smov 64   ;;  %s457_s29 = smov 4  }
  0x12   :  { %36 = dma.hbm_to_vmem [thread:$0]  %s562_s1, 256, %s31_s19, [#allocation7], %s456_s28, %s456_s28, %s457_s29  }
  0x13   :  { %s458_s7 = smov [#allocation3]   ;;  %s383_s11 = scalar_lea.hbm %s561_s0, 256 }
  0x14   :  { %s18_s8 = sshll.u32 %s458_s7, 4  ;;  %p384_p8 = scmp.ne.s32.totalorder %s561_s0, %s383_s11  ;;  %s19_s8 = int_to_ptr.vmem [resolvable:$true] %s18_s8 }
  0x15   :  { %p387_p9 = scmp.lt.u32.totalorder %s383_s11, %s561_s0 }
  0x17   :  { %p389_p10 = pnand %p387_p9, %p384_p8 }
  0x19   :  { %392 = shalt.err (!%p389_p10)
}
  0x1a   :  { %s393_s16 = scalar_lea.vmem %s19_s8, 256  ;;  %p398_p12 = scmp.lt.s32.totalorder %s19_s8, %s19_s8 }
  0x1b   :  { %p394_p11 = scmp.ne.s32.totalorder %s19_s8, %s393_s16  ;;  %p399_p13 = scmp.lt.s32.totalorder %s393_s16, %s393_s16 }
  0x1d   :  { %p400_p0 = por %p399_p13, %p398_p12 }
  0x1f   :  { %p401_p1 = pnand %p400_p0, %p394_p11 }
  0x21   :  { %404 = shalt.err (!%p401_p1)
}
  0x22   :  { %s459_s1 = smov 128   ;;  %s460_s17 = smov 8  }
  0x23   :  { %24 = dma.hbm_to_vmem [thread:$0]  %s561_s0, 256, %s19_s8, [#allocation4], %s459_s1, %s459_s1, %s460_s17  }
  0x24   :  { %s461_s20 = smov [#allocation8]   ;;  %s405_s24 = scalar_lea.hbm %s564_s3, 1024 }
  0x25   :  { %s44_s21 = sshll.u32 %s461_s20, 4  ;;  %p406_p2 = scmp.ne.s32.totalorder %s564_s3, %s405_s24  ;;  %s45_s21 = int_to_ptr.vmem [resolvable:$true] %s44_s21 }
  0x26   :  { %p409_p3 = scmp.lt.u32.totalorder %s405_s24, %s564_s3 }
  0x28   :  { %p411_p4 = pnand %p409_p3, %p406_p2 }
  0x2a   :  { %414 = shalt.err (!%p411_p4)
}
  0x2b   :  { %s415_s6 = scalar_lea.vmem %s45_s21, 1024  ;;  %p420_p6 = scmp.lt.s32.totalorder %s45_s21, %s45_s21 }
  0x2c   :  { %p416_p5 = scmp.ne.s32.totalorder %s45_s21, %s415_s6  ;;  %p421_p7 = scmp.lt.s32.totalorder %s415_s6, %s415_s6 }
  0x2e   :  { %p422_p8 = por %p421_p7, %p420_p6 }
  0x30   :  { %p423_p9 = pnand %p422_p8, %p416_p5 }
  0x32   :  { %426 = shalt.err (!%p423_p9)
}
  0x33   :  { %50 = dma.hbm_to_vmem [thread:$0]  %s564_s3, 1024, %s45_s21, [#allocation7], %s456_s28, %s456_s28, %s457_s29  }
  0x34   :  { %449 = dma.done.wait [#allocation4], 256  }
  0x35   :  { %450 = vsyncadd [#allocation4], 4294967040 }
  0x36   :  { %451 = dma.done.wait [#allocation7], 1280  }
  0x37   :  { %452 = vsyncadd [#allocation7], 4294966016  ;;  %v462_v0 = vmov 0.0   ;;  %vm463_vm0 = vmmov 0   ;;  %v351_v1 = vld [vmem:[#allocation6] sm:$0xff]   ;;  %v352_v2 = vld [vmem:[#allocation6 + $0x8] sm:$0xff]  }
  0x38   :  { %313 = vmatprep.subr.bf16.mxu0 %v462_v0  ;;  %317 = vmatprep.mubr.msk.bf16.mxu0 %vm463_vm0, %v462_v0  ;;  %v69_v3 = vld [vmem:[#allocation3] sm:$0xff]  ;;  %v70_v4 = vld [vmem:[#allocation3 + $0x8] sm:$0xff]  ;;  %vm95_vm1 = vcmask 261120   ;;  %v355_v8 = vld [vmem:[#allocation8 + $0x10] sm:$0xff]   ;;  %s464_s9 = smov [#allocation9]  }
  0x39   :  { %321 = vmatprep.subr.bf16.mxu1 %v462_v0  ;;  %337 = vmatprep.mubr.msk.bf16.mxu1 %vm463_vm0, %v462_v0  ;;  %v353_v5 = vld [vmem:[#allocation8] sm:$0xff]   ;;  %v71_v6 = vpack.c.bf16 %v70_v4, %v69_v3  ;;  %v354_v7 = vld [vmem:[#allocation8 + $0x8] sm:$0xff]   ;;  %v356_v9 = vld [vmem:[#allocation8 + $0x18] sm:$0xff]   ;;  %s275_s10 = sshll.u32 %s464_s9, 4  ;;  %s276_s10 = int_to_ptr.vmem [resolvable:$true] %s275_s10 }
  0x3a   :  { %314 = vmatpush3.bf16.msra.mxu0 %v351_v1  ;;  %322 = vmatpush3.bf16.msra.mxu1 %v353_v5  ;;  %v357_v10 = vld [vmem:[#allocation8 + $0x20] sm:$0xff]   ;;  %v358_v11 = vld [vmem:[#allocation8 + $0x28] sm:$0xff]   ;;  %v359_v12 = vld [vmem:[#allocation8 + $0x30] sm:$0xff]   ;;  %p432_p11 = scmp.lt.s32.totalorder %s276_s10, %s276_s10 }
  0x3b   :  { %315 = vmatprep.subr.bf16.mxu0 %v462_v0  ;;  %323 = vmatprep.subr.bf16.mxu1 %v462_v0  ;;  %v360_v13 = vld [vmem:[#allocation8 + $0x38] sm:$0xff]   ;;  %v288_v14 = vld [vmem:[%s563_s2] ss:$0 sm:$0xff]  ;;  %s427_s2 = scalar_lea.vmem %s276_s10, 256 }
  0x3c   :  { %v300_v24 = vld [vmem:[%s565_s4] ss:$0 sm:$0xff]  ;;  %p428_p10 = scmp.ne.s32.totalorder %s276_s10, %s427_s2  ;;  %p433_p12 = scmp.lt.s32.totalorder %s427_s2, %s427_s2 }
  0x3e   :  { %316 = vmatpush3.bf16.msra.mxu0 %v352_v2  ;;  %324 = vmatpush3.bf16.msra.mxu1 %v354_v7  ;;  %p434_p13 = por %p433_p12, %p432_p11 }
  0x3f   :  { %325 = vmatprep.subr.bf16.mxu1 %v462_v0 }
  0x40   :  { %p435_p0 = pnand %p434_p13, %p428_p10 }
  0x41   :  { %318 = vmatmul.mubr.msk.bf16.vlgmr.msra.gmra.mrb[0].mxu0 %vm95_vm1, %v71_v6 }
  0x42   :  { %326 = vmatpush3.bf16.msra.mxu1 %v355_v8 }
  0x43   :  { %327 = vmatprep.subr.bf16.mxu1 %v462_v0 }
  0x46   :  { %328 = vmatpush3.bf16.msra.mxu1 %v356_v9 }
  0x47   :  { %329 = vmatprep.subr.bf16.mxu1 %v462_v0 }
  0x4a   :  { %330 = vmatpush3.bf16.msra.mxu1 %v357_v10 }
  0x4b   :  { %331 = vmatprep.subr.bf16.mxu1 %v462_v0 }
  0x4e   :  { %332 = vmatpush3.bf16.msra.mxu1 %v358_v11 }
  0x4f   :  { %333 = vmatprep.subr.bf16.mxu1 %v462_v0 }
  0x52   :  { %334 = vmatpush3.bf16.msra.mxu1 %v359_v12 }
  0x53   :  { %335 = vmatprep.subr.bf16.mxu1 %v462_v0 }
  0x56   :  { %336 = vmatpush3.bf16.msra.mxu1 %v360_v13 }
 0x114   :  { %v133_v15 = vpop.f32.mrb[0].mxu0 }
 0x115   :  { %v134_v16 = vadd.f32 %v288_v14, %v133_v15  ;;  %v319_v17 = vpop.f32.mrb[1].mxu0 }
 0x116   :  { %v136_v18 = vpop.f32.mrb[2].mxu0 }
 0x117   :  { %v137_v19 = vadd.f32 %v288_v14, %v136_v18  ;;  %v320_v20 = vpop.f32.mrb[3].mxu0  ;;  %v140_v21 = vmax.f32 %v134_v16, 0.0 }
 0x119   :  { %v141_v22 = vmax.f32 %v137_v19, 0.0 }
 0x11b   :  { %v144_v23 = vpack.c.bf16 %v141_v22, %v140_v21 }
 0x11d   :  { %338 = vmatmul.mubr.bf16.vlgmr.msra.gmra.mrb[0].mxu1 %v144_v23 }
 0x1f0   :  { %v243_v25 = vpop.f32.mrb[0].mxu1 }
 0x1f1   :  { %v266_v26 = vadd.f32 %v300_v24, %v243_v25  ;;  %v339_v27 = vpop.f32.mrb[1].mxu1 }
 0x1f2   :  { %v246_v28 = vpop.f32.mrb[2].mxu1 }
 0x1f3   :  { %268 = vst [vmem:[#allocation9] sm:$0xff] %v266_v26  ;;  %v267_v29 = vadd.f32 %v300_v24, %v246_v28  ;;  %v340_v30 = vpop.f32.mrb[3].mxu1 }
 0x1f5   :  { %269 = vst [vmem:[#allocation9 + $0x8] sm:$0xff] %v267_v29 }
 0x1f6   :  { %438 = shalt.err (!%p435_p0)
}
 0x1f7   :  { %s439_s12 = scalar_lea.hbm %s566_s5, 256 }
 0x1f8   :  { %p440_p1 = scmp.ne.s32.totalorder %s566_s5, %s439_s12  ;;  %p443_p2 = scmp.lt.u32.totalorder %s439_s12, %s566_s5 }
 0x1fa   :  { %p445_p3 = pnand %p443_p2, %p440_p1 }
 0x1fc   :  { %448 = shalt.err (!%p445_p3)
}
 0x1fd   :  { %281 = dma.vmem_to_hbm [thread:$0]  %s276_s10, 256, %s566_s5, [#allocation5], %s459_s1, %s459_s1, %s460_s17  }
 0x1fe   :  { %453 = dma.done.wait [#allocation5], 256  }
 0x1ff   :  { %454 = vsyncadd [#allocation5], 4294967040 }
 0x200   :  { %285 = vsyncpa [#allocation4], 1 }
 0x201   :  { %286 = vsyncpa [#allocation7], 1 }
 0x202   :  { %287 = vsyncpa [#allocation5], 1 }

</bundles_post_ra>
